<compile_context>
chip_gen: v6e
topology: v6e:2x2x1
jax: 0.10.0
libtpu: 0.0.40
codegen_flags: <defaults>
</compile_context>

<pallas_src>
import functools

import jax
import jax.numpy as jnp
from jax.experimental import pallas as pl
from jax.experimental.pallas import tpu as pltpu  # noqa: F401  (TPU backend)

EPS = 1e-5
NEG_SLOPE = 0.5  # LeakyReLU(negative_slope=0.5)


def _mlp_kernel(n_hidden_layers, D, num_classes, inv_B, x_ref, p_ref, out_ref):
    """x_ref: (B, D) lane-padded input; p_ref: (R, D) packed parameter slab."""
    h = x_ref[...]                                   # (B, D) f32
    off = 0
    for _ in range(n_hidden_layers):
        gamma = p_ref[pl.ds(off + 0, 1), :]          # (1, D)
        beta = p_ref[pl.ds(off + 1, 1), :]           # (1, D)
        w = p_ref[pl.ds(off + 2, D), :]              # (D, D)
        b = p_ref[pl.ds(off + 2 + D, 1), :]          # (1, D)
        off += D + 3

        # BatchNorm1d, training-mode batch stats (biased variance), ONE pass.
        s1 = jnp.sum(h, axis=0, keepdims=True)                        # (1, D)
        s2 = jnp.sum(h * h, axis=0, keepdims=True)                    # (1, D)
        mu = s1 * inv_B
        var = s2 * inv_B - mu * mu
        scale = gamma * jax.lax.rsqrt(var + EPS)                      # (1, D)
        shift = beta - mu * scale                                     # (1, D)
        hn = h * scale + shift                                        # 2 VPU ops on h

        # Linear + LeakyReLU(0.5)  (padded lanes stay exactly 0)
        z = jnp.dot(hn, w, preferred_element_type=jnp.float32) + b
        h = jnp.maximum(z, NEG_SLOPE * z)

    wf = p_ref[pl.ds(off, D), :]                     # (D, D)
    bf = p_ref[pl.ds(off + D, 1), :]                 # (1, D)
    logits = jnp.dot(h, wf, preferred_element_type=jnp.float32) + bf  # (B, D)

    # Mask padded class lanes so they do not pollute the softmax denominator.
    lane = jax.lax.broadcasted_iota(jnp.int32, logits.shape, 1)
    logits = jnp.where(lane < num_classes, logits, jnp.float32(-1e30))

    m = jnp.max(logits, axis=1, keepdims=True)
    e = jnp.exp(logits - m)
    denom = jnp.sum(e, axis=1, keepdims=True)
    # Exact (non-approx) reciprocal: rows normalize to 1 within f32 rounding.
    out_ref[...] = e * pl.reciprocal(denom, approx=False)  # lane-dense (B,128) store


def _pad2d(a, rows, cols):
    return jnp.pad(a, ((0, rows - a.shape[0]), (0, cols - a.shape[1])))


def init_params(key, n_inputs, num_classes=2, architecture=(8,)):
    """Deterministic synthetic parameters (shapes match the torch module)."""
    n_units = [n_inputs] + list(architecture)
    params = []
    for i in range(len(n_units) - 1):
        n_in, n_out = n_units[i], n_units[i + 1]
        key, k1, k2, k3, k4 = jax.random.split(key, 5)
        gamma = 1.0 + 0.1 * jax.random.normal(k1, (1, n_in), jnp.float32)
        beta = 0.1 * jax.random.normal(k2, (1, n_in), jnp.float32)
        w = jax.random.normal(k3, (n_in, n_out), jnp.float32) / jnp.sqrt(n_in)
        b = 0.1 * jax.random.normal(k4, (1, n_out), jnp.float32)
        params += [gamma, beta, w, b]
    key, k1, k2 = jax.random.split(key, 3)
    wf = jax.random.normal(k1, (architecture[-1], num_classes), jnp.float32) / jnp.sqrt(
        architecture[-1]
    )
    bf = 0.1 * jax.random.normal(k2, (1, num_classes), jnp.float32)
    params += [wf, bf]
    return params


def pack_params(params, n_hidden_layers, D):
    """Pack all params into one (R, D) f32 slab; R padded to a multiple of 8.

    Call ONCE at setup (params are call-invariant); pass the slab to forward.
    """
    rows = []
    idx = 0
    for _ in range(n_hidden_layers):
        gamma, beta, w, b = params[idx : idx + 4]
        idx += 4
        rows.append(_pad2d(gamma.reshape(1, -1), 1, D))
        rows.append(_pad2d(beta.reshape(1, -1), 1, D))
        rows.append(_pad2d(w, D, D))
        rows.append(_pad2d(b.reshape(1, -1), 1, D))
    wf, bf = params[idx], params[idx + 1]
    rows.append(_pad2d(wf, D, D))
    rows.append(_pad2d(bf.reshape(1, -1), 1, D))
    slab = jnp.concatenate(rows, axis=0).astype(jnp.float32)
    r = slab.shape[0]
    r_pad = -(-r // 8) * 8
    return jnp.pad(slab, ((0, r_pad - r), (0, 0)))


def make_forward(n_inputs, num_classes, architecture):
    """Build a jitted forward(x, slab) for a fixed model configuration.

    Returns (forward_fn, D) where D is the lane-dense working width used by
    pack_params.
    """
    n_hidden = len(architecture)
    dims = [n_inputs] + list(architecture) + [num_classes]
    D = 128 * pl.cdiv(max(dims), 128)                 # lane-dense working width

    def forward(x, slab):
        B = x.shape[0]
        xf = x.reshape(B, -1).astype(jnp.float32)      # flatten(start_dim=1)
        x_pad = jnp.pad(xf, ((0, 0), (0, D - n_inputs)))   # (B, D)

        # Cost of the padded D-wide math the kernel actually executes.
        flops = (n_hidden + 1) * 2 * B * D * D + n_hidden * 12 * B * D + 6 * B * D
        cost = pl.CostEstimate(
            flops=int(flops),
            transcendentals=int(B * D + n_hidden * D + B),  # exp + rsqrt + recip
            bytes_accessed=int(x_pad.size * 4 + slab.size * 4 + B * D * 4),
        )

        kernel = functools.partial(_mlp_kernel, n_hidden, D, num_classes, 1.0 / B)
        out = pl.pallas_call(
            kernel,
            out_shape=jax.ShapeDtypeStruct((B, D), jnp.float32),
            in_specs=[
                pl.BlockSpec(x_pad.shape, lambda: (0, 0)),
                pl.BlockSpec(slab.shape, lambda: (0, 0)),
            ],
            out_specs=pl.BlockSpec((B, D), lambda: (0, 0)),
            cost_estimate=cost,
        )(x_pad, slab)
        return out[:, :num_classes]

    # Single fused executable: pad + pallas_call + class-lane slice.
    return jax.jit(forward), D


def reference_forward(x, params, n_hidden_layers):
    """Pure-JAX reference mirroring the PyTorch module (train-mode BN)."""
    h = x.reshape(x.shape[0], -1).astype(jnp.float32)
    idx = 0
    for _ in range(n_hidden_layers):
        gamma, beta, w, b = params[idx : idx + 4]
        idx += 4
        mu = jnp.mean(h, axis=0, keepdims=True)
        var = jnp.mean((h - mu) ** 2, axis=0, keepdims=True)
        hn = (h - mu) / jnp.sqrt(var + EPS) * gamma + beta
        z = hn @ w + b
        h = jnp.where(z >= 0, z, NEG_SLOPE * z)
    wf, bf = params[idx], params[idx + 1]
    logits = h @ wf + bf
    return jax.nn.softmax(logits, axis=1)


if __name__ == "__main__":
    # Small shapes: batch=8, raw input (8, 4, 4) -> flattened n_inputs=16,
    # architecture=[8], num_classes=2 (module defaults).
    n_inputs = 16
    architecture = [8]
    num_classes = 2
    B = 8

    key = jax.random.PRNGKey(0)
    key, kx, kp = jax.random.split(key, 3)
    x = jax.random.normal(kx, (B, 4, 4), jnp.float32)   # flattened to (B, 16)
    params = init_params(kp, n_inputs, num_classes, tuple(architecture))

    # One-time setup: build the jitted forward and pre-pack the parameter slab.
    forward, D = make_forward(n_inputs, num_classes, architecture)
    slab = jax.block_until_ready(pack_params(params, len(architecture), D))

    out = forward(x, slab)
    out = jax.block_until_ready(out)

    ref = reference_forward(x, params, len(architecture))
    assert out.shape == (B, num_classes)
    # 2e-3 tolerance absorbs EUP transcendental (exp/rsqrt) rounding plus the
    # fused-affine / one-pass-variance reassociation vs. the naive reference.
    assert jnp.allclose(out, ref, atol=2e-3, rtol=2e-3), (out, ref)
    # rows of a softmax must sum to ~1 (exact reciprocal -> tight tolerance)
    assert jnp.allclose(jnp.sum(out, axis=1), 1.0, atol=1e-4)

    print("KERNEL_OK")
</pallas_src>

<mosaic_0001>
module attributes {stable_mosaic.version = 11 : i64} {
  func.func @_mlp_kernel(%arg0: memref<8x128xf32, #tpu.memory_space<vmem>>, %arg1: memref<264x128xf32, #tpu.memory_space<vmem>>, %arg2: memref<8x128xf32, #tpu.memory_space<vmem>>) attributes {dimension_semantics = [], scalar_prefetch = 0 : i64, scratch_operands = 0 : i64, tpu.core_type = #tpu.core_type<tc>} {
    %c0 = arith.constant 0 : index
    %c0_0 = arith.constant 0 : index
    %0 = vector.load %arg0[%c0, %c0_0] : memref<8x128xf32, #tpu.memory_space<vmem>>, vector<8x128xf32>
    %c0_1 = arith.constant 0 : index
    %c0_2 = arith.constant 0 : index
    %1 = vector.load %arg1[%c0_1, %c0_2] : memref<264x128xf32, #tpu.memory_space<vmem>>, vector<1x128xf32>
    %c1 = arith.constant 1 : index
    %c0_3 = arith.constant 0 : index
    %2 = vector.load %arg1[%c1, %c0_3] : memref<264x128xf32, #tpu.memory_space<vmem>>, vector<1x128xf32>
    %c2 = arith.constant 2 : index
    %c0_4 = arith.constant 0 : index
    %3 = vector.load %arg1[%c2, %c0_4] : memref<264x128xf32, #tpu.memory_space<vmem>>, vector<128x128xf32>
    %c130 = arith.constant 130 : index
    %c0_5 = arith.constant 0 : index
    %4 = vector.load %arg1[%c130, %c0_5] : memref<264x128xf32, #tpu.memory_space<vmem>>, vector<1x128xf32>
    %cst = arith.constant dense<0.000000e+00> : vector<128xf32>
    %5 = vector.multi_reduction <add>, %0, %cst [0] : vector<8x128xf32> to vector<128xf32>
    %6 = vector.shape_cast %5 : vector<128xf32> to vector<1x128xf32>
    %7 = arith.mulf %0, %0 : vector<8x128xf32>
    %cst_6 = arith.constant dense<0.000000e+00> : vector<128xf32>
    %8 = vector.multi_reduction <add>, %7, %cst_6 [0] : vector<8x128xf32> to vector<128xf32>
    %9 = vector.shape_cast %8 : vector<128xf32> to vector<1x128xf32>
    %cst_7 = arith.constant 1.250000e-01 : f32
    %10 = vector.broadcast %cst_7 : f32 to vector<1x128xf32>
    %11 = arith.mulf %6, %10 : vector<1x128xf32>
    %cst_8 = arith.constant 1.250000e-01 : f32
    %12 = vector.broadcast %cst_8 : f32 to vector<1x128xf32>
    %13 = arith.mulf %9, %12 : vector<1x128xf32>
    %14 = arith.mulf %11, %11 : vector<1x128xf32>
    %15 = arith.subf %13, %14 : vector<1x128xf32>
    %cst_9 = arith.constant 9.99999974E-6 : f32
    %16 = vector.broadcast %cst_9 : f32 to vector<1x128xf32>
    %17 = arith.addf %15, %16 : vector<1x128xf32>
    %18 = math.rsqrt %17 : vector<1x128xf32>
    %19 = arith.mulf %1, %18 : vector<1x128xf32>
    %20 = arith.mulf %11, %19 : vector<1x128xf32>
    %21 = arith.subf %2, %20 : vector<1x128xf32>
    %22 = vector.broadcast %19 : vector<1x128xf32> to vector<8x128xf32>
    %23 = arith.mulf %0, %22 : vector<8x128xf32>
    %24 = vector.broadcast %21 : vector<1x128xf32> to vector<8x128xf32>
    %25 = arith.addf %23, %24 : vector<8x128xf32>
    %cst_10 = arith.constant dense<0.000000e+00> : vector<8x128xf32>
    %26 = tpu.matmul %25, %3, %cst_10 {dimension_numbers = #tpu.dot_dimension_numbers<[1], [0], [0], [1], [0, 0, 1, 1], [], []>} : vector<8x128xf32>, vector<128x128xf32>, vector<8x128xf32> -> vector<8x128xf32>
    %27 = vector.broadcast %4 : vector<1x128xf32> to vector<8x128xf32>
    %28 = arith.addf %26, %27 : vector<8x128xf32>
    %cst_11 = arith.constant 5.000000e-01 : f32
    %29 = vector.broadcast %cst_11 : f32 to vector<8x128xf32>
    %30 = arith.mulf %29, %28 : vector<8x128xf32>
    %31 = arith.maximumf %28, %30 : vector<8x128xf32>
    %c131 = arith.constant 131 : index
    %c0_12 = arith.constant 0 : index
    %32 = vector.load %arg1[%c131, %c0_12] : memref<264x128xf32, #tpu.memory_space<vmem>>, vector<128x128xf32>
    %c259 = arith.constant 259 : index
    %c0_13 = arith.constant 0 : index
    %33 = vector.load %arg1[%c259, %c0_13] : memref<264x128xf32, #tpu.memory_space<vmem>>, vector<1x128xf32>
    %cst_14 = arith.constant dense<0.000000e+00> : vector<8x128xf32>
    %34 = tpu.matmul %31, %32, %cst_14 {dimension_numbers = #tpu.dot_dimension_numbers<[1], [0], [0], [1], [0, 0, 1, 1], [], []>} : vector<8x128xf32>, vector<128x128xf32>, vector<8x128xf32> -> vector<8x128xf32>
    %35 = vector.broadcast %33 : vector<1x128xf32> to vector<8x128xf32>
    %36 = arith.addf %34, %35 : vector<8x128xf32>
    %37 = tpu.iota {dimensions = array<i32: 1>} : vector<8x128xi32>
    %c2_i32 = arith.constant 2 : i32
    %38 = vector.broadcast %c2_i32 : i32 to vector<8x128xi32>
    %39 = arith.cmpi slt, %37, %38 : vector<8x128xi32>
    %cst_15 = arith.constant -1.000000e+30 : f32
    %40 = vector.broadcast %cst_15 : f32 to vector<8x128xf32>
    %41 = arith.select %39, %36, %40 : vector<8x128xi1>, vector<8x128xf32>
    %cst_16 = arith.constant dense<0xFF800000> : vector<8xf32>
    %42 = vector.multi_reduction <maximumf>, %41, %cst_16 [1] : vector<8x128xf32> to vector<8xf32>
    %43 = vector.shape_cast %42 : vector<8xf32> to vector<8x1xf32>
    %44 = vector.broadcast %43 : vector<8x1xf32> to vector<8x128xf32>
    %45 = arith.subf %41, %44 : vector<8x128xf32>
    %46 = math.exp %45 : vector<8x128xf32>
    %cst_17 = arith.constant dense<0.000000e+00> : vector<8xf32>
    %47 = vector.multi_reduction <add>, %46, %cst_17 [1] : vector<8x128xf32> to vector<8xf32>
    %48 = vector.shape_cast %47 : vector<8xf32> to vector<8x1xf32>
    %49 = tpu.reciprocal %48 : vector<8x1xf32> -> vector<8x1xf32>
    %50 = vector.broadcast %49 : vector<8x1xf32> to vector<8x128xf32>
    %51 = arith.mulf %46, %50 : vector<8x128xf32>
    %c0_18 = arith.constant 0 : index
    %c0_19 = arith.constant 0 : index
    %52 = vector.load %arg2[%c0_18, %c0_19] : memref<8x128xf32, #tpu.memory_space<vmem>>, vector<8x128xf32>
    tpu.vector_store %arg2[%c0_18, %c0_19], %51 {strides = array<i32>} : memref<8x128xf32, #tpu.memory_space<vmem>>, vector<8x128xf32>,
    return
  }
}

</mosaic_0001>

<bundles_post_ra>
// kernel: forward.1
= control target key start
LH: loop header
LB: loop body
LE: loop exit
PB: predicated region body
PF: predicated region fallthrough
CT: control target
= control target key end

     0   :  { %7 = vsyncpa [#allocation3], 0  ;;  %s402_s9 = smov [#allocation2]   ;;  %s472_s0 = inlined_call_operand.vmem [shape: f32[8,128], index: 0, kind: input, shape index: {}]   ;;  %s473_s1 = inlined_call_operand.hbm [shape: f32[264,128], index: 1, kind: input, shape index: {}]   ;;  %s474_s2 = inlined_call_operand.vmem [shape: f32[8,128], index: 2, kind: output, shape index: {}]  }
   0x1   :  { %s15_s10 = sshll.u32 %s402_s9, 4  ;;  %s16_s10 = int_to_ptr.vmem [resolvable:$true] %s15_s10 }
   0x2   :  { %s388_s11 = scalar_lea.vmem %s16_s10, 4224  ;;  %p393_p1 = scmp.lt.s32.totalorder %s16_s10, %s16_s10 }
   0x3   :  { %p389_p0 = scmp.ne.s32.totalorder %s16_s10, %s388_s11  ;;  %p394_p2 = scmp.lt.s32.totalorder %s388_s11, %s388_s11 }
   0x5   :  { %p395_p3 = por %p394_p2, %p393_p1 }
   0x7   :  { %p396_p4 = pnand %p395_p3, %p389_p0 }
   0x9   :  { %399 = shalt.err (!%p396_p4)
}
   0xa   :  { %s403_s12 = smov 128   ;;  %s404_s13 = smov 8  }
   0xb   :  { %21 = dma.hbm_to_vmem [thread:$0]  %s473_s1, 4224, %s16_s10, [#allocation3], %s403_s12, %s403_s12, %s404_s13  }
   0xc   :  { %400 = dma.done.wait [#allocation3], 4224  }
   0xd   :  { %401 = vsyncadd [#allocation3], 4294963072  ;;  %v405_v0 = vmov 0.0   ;;  %vm406_vm0 = vmmov 0   ;;  %v43_v1 = vld [vmem:[#allocation2 + $0x7a] sm:$0xff]  ;;  %v42_v2 = vld [vmem:[#allocation2 + $0x72] sm:$0xff]  ;;  %v67_v48 = vlaneseq }
   0xe   :  { %299 = vmatprep.subr.mxu0 %v405_v0  ;;  %331 = vmatprep.mubr.msk.f32.mxu0 %vm406_vm0, %v405_v0  ;;  %v41_v3 = vld [vmem:[#allocation2 + $0x6a] sm:$0xff]  ;;  %v40_v4 = vld [vmem:[#allocation2 + $0x62] sm:$0xff]  ;;  %v39_v6 = vld [vmem:[#allocation2 + $0x5a] sm:$0xff] }
   0xf   :  { %334 = vmatprep.subr.mxu1 %v405_v0  ;;  %366 = vmatprep.mubr.msk.f32.mxu1 %vm406_vm0, %v405_v0  ;;  %v434_v5 = vld [vmem:[%s472_s0] sm:$0xff]  ;;  %v167_v10 = vld [vmem:[#allocation2 + $0xf3] sm:$0xff]  ;;  %v166_v14 = vld [vmem:[#allocation2 + $0xeb] sm:$0xff]  ;;  %v68_v49 = vshrl.u32 %v67_v48, 7 }
  0x10   :  { %300 = vmatpush3.msra.mxu0 %v43_v1  ;;  %v45_v7 = vrot.slane %v434_v5, 4  ;;  %v51_v8 = vmul.f32 %v434_v5, %v434_v5  ;;  %v168_v9 = vld [vmem:[#allocation2 + $0xfb] sm:$0xff]  ;;  %v38_v11 = vld [vmem:[#allocation2 + $0x52] sm:$0xff]  ;;  %v37_v15 = vld [vmem:[#allocation2 + $0x4a] sm:$0xff] }
  0x11   :  { %301 = vmatprep.subr.mxu0 %v405_v0  ;;  %335 = vmatpush3.msra.mxu1 %v168_v9  ;;  %v165_v18 = vld [vmem:[#allocation2 + $0xe3] sm:$0xff]  ;;  %v164_v22 = vld [vmem:[#allocation2 + $0xdb] sm:$0xff]  ;;  %v163_v26 = vld [vmem:[#allocation2 + $0xd3] sm:$0xff]  ;;  %v69_v51 = vsub.s32 0, %v68_v49 }
  0x12   :  { %302 = vmatpush3.msra.mxu0 %v42_v2  ;;  %v46_v12 = vadd.f32 %v45_v7, %v434_v5  ;;  %v52_v13 = vrot.slane %v51_v8, 4  ;;  %336 = vmatprep.subr.mxu1 %v405_v0  ;;  %v36_v19 = vld [vmem:[#allocation2 + $0x42] sm:$0xff]  ;;  %v35_v23 = vld [vmem:[#allocation2 + $0x3a] sm:$0xff]  ;;  %v34_v27 = vld [vmem:[#allocation2 + $0x32] sm:$0xff] }
  0x13   :  { %303 = vmatprep.subr.mxu0 %v405_v0  ;;  %337 = vmatpush3.msra.mxu1 %v167_v10  ;;  %v162_v30 = vld [vmem:[#allocation2 + $0xcb] sm:$0xff]  ;;  %v161_v34 = vld [vmem:[#allocation2 + $0xc3] sm:$0xff]  ;;  %v160_v38 = vld [vmem:[#allocation2 + $0xbb] sm:$0xff] }
  0x14   :  { %304 = vmatpush3.msra.mxu0 %v41_v3  ;;  %v47_v16 = vrot.slane %v46_v12, 2  ;;  %v53_v17 = vadd.f32 %v52_v13, %v51_v8  ;;  %338 = vmatprep.subr.mxu1 %v405_v0  ;;  %v33_v31 = vld [vmem:[#allocation2 + $0x2a] sm:$0xff]  ;;  %v32_v35 = vld [vmem:[#allocation2 + $0x22] sm:$0xff]  ;;  %v31_v39 = vld [vmem:[#allocation2 + $0x1a] sm:$0xff]  ;;  %v245_v8 = vand.u32 127, %v67_v48 }
  0x15   :  { %305 = vmatprep.subr.mxu0 %v405_v0  ;;  %339 = vmatpush3.msra.mxu1 %v166_v14  ;;  %v159_v41 = vld [vmem:[#allocation2 + $0xb3] sm:$0xff]  ;;  %v158_v44 = vld [vmem:[#allocation2 + $0xab] sm:$0xff]  ;;  %v157_v46 = vld [vmem:[#allocation2 + $0xa3] sm:$0xff] }
  0x16   :  { %306 = vmatpush3.msra.mxu0 %v40_v4  ;;  %v48_v20 = vadd.f32 %v47_v16, %v46_v12  ;;  %v54_v21 = vrot.slane %v53_v17, 2  ;;  %340 = vmatprep.subr.mxu1 %v405_v0  ;;  %v30_v42 = vld [vmem:[#allocation2 + $0x12] sm:$0xff]  ;;  %v29_v45 = vld [vmem:[#allocation2 + $0xa] sm:$0xff]  ;;  %v28_v47 = vld [vmem:[#allocation2 + $0x2] sm:$0xff]  ;;  %vm246_vm1 = vcmp.lt.s32.totalorder %v245_v8, 2 }
  0x17   :  { %307 = vmatprep.subr.mxu0 %v405_v0  ;;  %341 = vmatpush3.msra.mxu1 %v165_v18  ;;  %v26_v50 = vld [vmem:[#allocation2] sm:$0x1]  ;;  %v27_v54 = vld [vmem:[#allocation2 + $0x1] sm:$0x1]  ;;  %v155_v62 = vld [vmem:[#allocation2 + $0x93] sm:$0xff] }
  0x18   :  { %308 = vmatpush3.msra.mxu0 %v39_v6  ;;  %v49_v24 = vrot.slane %v48_v20, 1  ;;  %v55_v25 = vadd.f32 %v54_v21, %v53_v17  ;;  %342 = vmatprep.subr.mxu1 %v405_v0  ;;  %v156_v61 = vld [vmem:[#allocation2 + $0x9b] sm:$0xff]  ;;  %v154_v63 = vld [vmem:[#allocation2 + $0x8b] sm:$0xff]  ;;  %v153_v1 = vld [vmem:[#allocation2 + $0x83] sm:$0xff] }
  0x19   :  { %309 = vmatprep.subr.mxu0 %v405_v0  ;;  %343 = vmatpush3.msra.mxu1 %v164_v22  ;;  %v263_v2 = vld [vmem:[#allocation2 + $0x82] ss:$0 sm:$0xff]  ;;  %v264_v9 = vld [vmem:[#allocation2 + $0x103] ss:$0 sm:$0xff] }
  0x1a   :  { %310 = vmatpush3.msra.mxu0 %v38_v11  ;;  %v50_v28 = vadd.f32 %v49_v24, %v48_v20  ;;  %v56_v29 = vrot.slane %v55_v25, 1  ;;  %344 = vmatprep.subr.mxu1 %v405_v0 }
  0x1b   :  { %311 = vmatprep.subr.mxu0 %v405_v0  ;;  %345 = vmatpush3.msra.mxu1 %v163_v26 }
  0x1c   :  { %312 = vmatpush3.msra.mxu0 %v37_v15  ;;  %v57_v32 = vadd.f32 %v56_v29, %v55_v25  ;;  %v58_v33 = vmul.f32 0.125, %v50_v28  ;;  %346 = vmatprep.subr.mxu1 %v405_v0 }
  0x1d   :  { %313 = vmatprep.subr.mxu0 %v405_v0  ;;  %347 = vmatpush3.msra.mxu1 %v162_v30 }
  0x1e   :  { %314 = vmatpush3.msra.mxu0 %v36_v19  ;;  %v59_v36 = vmul.f32 0.125, %v57_v32  ;;  %v60_v37 = vmul.f32 %v58_v33, %v58_v33  ;;  %348 = vmatprep.subr.mxu1 %v405_v0 }
  0x1f   :  { %315 = vmatprep.subr.mxu0 %v405_v0  ;;  %349 = vmatpush3.msra.mxu1 %v161_v34 }
  0x20   :  { %316 = vmatpush3.msra.mxu0 %v35_v23  ;;  %v61_v40 = vsub.f32 %v59_v36, %v60_v37  ;;  %350 = vmatprep.subr.mxu1 %v405_v0 }
  0x21   :  { %317 = vmatprep.subr.mxu0 %v405_v0  ;;  %351 = vmatpush3.msra.mxu1 %v160_v38 }
  0x22   :  { %318 = vmatpush3.msra.mxu0 %v34_v27  ;;  %v62_v43 = vadd.f32 1e-05, %v61_v40  ;;  %352 = vmatprep.subr.mxu1 %v405_v0 }
  0x23   :  { %319 = vmatprep.subr.mxu0 %v405_v0  ;;  %353 = vmatpush3.msra.mxu1 %v159_v41 }
  0x24   :  { %320 = vmatpush3.msra.mxu0 %v33_v31  ;;  %374 = vrsqrt.f32 %v62_v43  ;;  %354 = vmatprep.subr.mxu1 %v405_v0 }
  0x25   :  { %321 = vmatprep.subr.mxu0 %v405_v0  ;;  %355 = vmatpush3.msra.mxu1 %v158_v44 }
  0x26   :  { %322 = vmatpush3.msra.mxu0 %v32_v35  ;;  %356 = vmatprep.subr.mxu1 %v405_v0 }
  0x27   :  { %323 = vmatprep.subr.mxu0 %v405_v0  ;;  %357 = vmatpush3.msra.mxu1 %v157_v46 }
  0x28   :  { %324 = vmatpush3.msra.mxu0 %v31_v39  ;;  %358 = vmatprep.subr.mxu1 %v405_v0 }
  0x29   :  { %325 = vmatprep.subr.mxu0 %v405_v0  ;;  %359 = vmatpush3.msra.mxu1 %v156_v61 }
  0x2a   :  { %326 = vmatpush3.msra.mxu0 %v30_v42  ;;  %360 = vmatprep.subr.mxu1 %v405_v0 }
  0x2b   :  { %327 = vmatprep.subr.mxu0 %v405_v0  ;;  %361 = vmatpush3.msra.mxu1 %v155_v62 }
  0x2c   :  { %328 = vmatpush3.msra.mxu0 %v29_v45  ;;  %362 = vmatprep.subr.mxu1 %v405_v0 }
  0x2d   :  { %329 = vmatprep.subr.mxu0 %v405_v0  ;;  %363 = vmatpush3.msra.mxu1 %v154_v63 }
  0x2e   :  { %330 = vmatpush3.msra.mxu0 %v28_v47  ;;  %364 = vmatprep.subr.mxu1 %v405_v0 }
  0x2f   :  { %365 = vmatpush3.msra.mxu1 %v153_v1 }
  0x31   :  { %v375_v52 = vpop.eup %374 }
  0x32   :  { %v64_v53 = vmul.f32 %v375_v52, %v26_v50 }
  0x34   :  { %v65_v55 = vmul.f32 %v64_v53, %v58_v33  ;;  %v70_v56 = vrot.slane %v64_v53, %v69_v51 }
  0x36   :  { %v66_v57 = vsub.f32 %v27_v54, %v65_v55  ;;  %v71_v58 = vmul.f32 %v70_v56, %v434_v5 }
  0x38   :  { %v75_v59 = vrot.slane %v66_v57, %v69_v51 }
  0x3a   :  { %v76_v60 = vadd.f32 %v75_v59, %v71_v58 }
  0x3c   :  { %332 = vmatmul.mubr.f32.vlgmr.msra.gmra.mxu0 %v76_v60 }
  0xfc   :  { %v147_v3 = vpop.f32.mrf.mxu0 }
  0xfd   :  { %v148_v4 = vadd.f32 %v263_v2, %v147_v3 }
  0xfe   :  { %v333_v5 = vpop.f32.mrf.mxu0 }
  0xff   :  { %v151_v6 = vmul.f32 0.5, %v148_v4 }
 0x101   :  { %v152_v7 = vmax.f32 %v148_v4, %v151_v6 }
 0x103   :  { %367 = vmatmul.mubr.f32.vlgmr.msra.gmra.mxu1 %v152_v7 }
 0x1c3   :  { %v240_v10 = vpop.f32.mrf.mxu1 }
 0x1c4   :  { %v241_v11 = vadd.f32 %v264_v9, %v240_v10 }
 0x1c5   :  { %v368_v12 = vpop.f32.mrf.mxu1 }
 0x1c6   :  { %v247_v13 = vsel %vm246_vm1, %v241_v11, -1e+30 }
 0x1c7   :  { %248 = vmax.xlane.f32.xlu0 %v247_v13 }
 0x250   :  { %v249_v14 = vpop.xlane.xlu0 %248 }
 0x251   :  { %v250_v15 = vsub.f32 %v247_v13, %v249_v14 }
 0x253   :  { %v251_v0 = vmul.f32 1.442695, %v250_v15 }
 0x255   :  { %376 = vpow2.f32 %v251_v0 }
 0x262   :  { %v377_v16 = vpop.eup %376 }
 0x263   :  { %253 = vadd.xlane.f32.xlu0 %v377_v16 }
 0x2ec   :  { %v254_v17 = vpop.xlane.xlu0 %253 }
 0x2ed   :  { %378 = vrcp.f32 %v254_v17 }
 0x2fa   :  { %v379_v18 = vpop.eup %378 }
 0x2fb   :  { %v256_v19 = vmul.f32 %v379_v18, %v377_v16 }
 0x2fd   :  { %257 = vst [vmem:[%s474_s2] sm:$0xff] %v256_v19 }
 0x2fe   :  { %262 = vsyncpa [#allocation3], 1 }

</bundles_post_ra>
